<compile_context>
chip_gen: v7x
topology: tpu7x:2x2x1
jax: 0.10.0
libtpu: 0.0.40
codegen_flags: <defaults>
</compile_context>

<pallas_src>
import functools

import jax
import jax.numpy as jnp
from jax.experimental import pallas as pl
from jax.experimental.pallas import tpu as pltpu

HIDDEN = 64          # logical hidden width (matches PyTorch module)
HIDDEN_PAD = 128     # lane-dense hidden width used inside the kernel
SUBLANES = 8

_VMEM_TILE_BUDGET = 24 * 1024 * 1024   # working-set target for tile selection
_VMEM_LIMIT_BYTES = 30 * 1024 * 1024   # explicit scoped-VMEM limit (fits every gen)


def _cdiv(a, b):
    return -(-a // b)


def _round_up(x, m):
    return _cdiv(x, m) * m


def dqn_kernel(x_ref, w1_ref, b1_ref, w2_ref, b2_ref, w3_ref, b3_ref, o_ref):
    # fc1 + ReLU   (bf16 MXU inputs, f32 accumulation, f32 epilogue)
    x = x_ref[...].astype(jnp.bfloat16)
    h1 = jnp.dot(x, w1_ref[...], preferred_element_type=jnp.float32)
    h1 = jnp.maximum(h1 + b1_ref[...], 0.0).astype(jnp.bfloat16)
    # fc2 + ReLU
    h2 = jnp.dot(h1, w2_ref[...], preferred_element_type=jnp.float32)
    h2 = jnp.maximum(h2 + b2_ref[...], 0.0).astype(jnp.bfloat16)
    # fc3 (no activation) -> narrow (tm, out_size) store, minimal HBM writeback
    out = jnp.dot(h2, w3_ref[...], preferred_element_type=jnp.float32)
    o_ref[...] = (out + b3_ref[...]).astype(o_ref.dtype)


def init_params(key, input_size, output_size):
    """PyTorch-like init: uniform(-1/sqrt(fan_in), 1/sqrt(fan_in)). Logical shapes."""
    ks = jax.random.split(key, 6)

    def linear(kw, kb, fan_in, fan_out):
        bound = 1.0 / jnp.sqrt(float(fan_in))
        w = jax.random.uniform(kw, (fan_in, fan_out), jnp.float32, -bound, bound)
        b = jax.random.uniform(kb, (1, fan_out), jnp.float32, -bound, bound)
        return w, b

    w1, b1 = linear(ks[0], ks[1], input_size, HIDDEN)
    w2, b2 = linear(ks[2], ks[3], HIDDEN, HIDDEN)
    w3, b3 = linear(ks[4], ks[5], HIDDEN, output_size)
    return dict(w1=w1, b1=b1, w2=w2, b2=b2, w3=w3, b3=b3)


def prepare_params(p):
    """Zero-pad hidden width to 128 (exact) and cast matmul operands to bf16 (once).

    The output width is NOT padded: fc3 weights stay (128, out_size) so the
    kernel can store a narrow, unpadded output block.
    """
    in_size = p["w1"].shape[0]
    out_size = p["w3"].shape[1]

    w1 = jnp.zeros((in_size, HIDDEN_PAD), jnp.float32).at[:, :HIDDEN].set(p["w1"])
    b1 = jnp.zeros((1, HIDDEN_PAD), jnp.float32).at[:, :HIDDEN].set(p["b1"])
    w2 = jnp.zeros((HIDDEN_PAD, HIDDEN_PAD), jnp.float32).at[:HIDDEN, :HIDDEN].set(p["w2"])
    b2 = jnp.zeros((1, HIDDEN_PAD), jnp.float32).at[:, :HIDDEN].set(p["b2"])
    w3 = jnp.zeros((HIDDEN_PAD, out_size), jnp.float32).at[:HIDDEN, :].set(p["w3"])
    b3 = p["b3"].astype(jnp.float32)                       # (1, out_size)

    return dict(
        w1=w1.astype(jnp.bfloat16), b1=b1,
        w2=w2.astype(jnp.bfloat16), b2=b2,
        w3=w3.astype(jnp.bfloat16), b3=b3,
    )


def _choose_tile(batch, in_size, out_size, x_itemsize, block_rows):
    """Row tile with minimal per-step padding, clamped to a VMEM budget."""
    n_steps = max(1, _cdiv(batch, block_rows))
    tm = _round_up(max(1, _cdiv(batch, n_steps)), SUBLANES)

    weight_bytes = ((in_size + HIDDEN_PAD + out_size) * HIDDEN_PAD * 2
                    + (2 * HIDDEN_PAD + out_size) * 4)

    def footprint(t):
        stream = 2 * t * in_size * x_itemsize + 2 * t * out_size * 4  # dbl-buffered x/out
        interm = 2 * t * HIDDEN_PAD * (4 + 2)                         # h1/h2 f32 + bf16 casts
        return stream + interm + weight_bytes

    # Clamp for large flattened observations (keeps v5e/v6e/v7x happy).
    # TODO(synk): K-tile fc1 over in_size (grid axis + f32 accumulator) instead of
    #             shrinking tm below ~256 for very large input_size.
    while tm > SUBLANES and footprint(tm) > _VMEM_TILE_BUDGET:
        tm = _round_up(tm // 2, SUBLANES)
    return tm


@functools.partial(jax.jit, static_argnames=("block_rows",))
def dqn_forward(x, params, block_rows=2048):
    """x: (B, input_size) f32 or bf16. params: prepare_params output. Returns (B, out_size) f32."""
    B, in_size = x.shape
    out_size = params["w3"].shape[1]
    if B == 0:
        return jnp.zeros((0, out_size), jnp.float32)

    tm = _choose_tile(B, in_size, out_size, x.dtype.itemsize, block_rows)
    grid = (_cdiv(B, tm),)

    const = lambda shape: pl.BlockSpec(shape, lambda i: (0,) * len(shape))

    return pl.pallas_call(
        dqn_kernel,
        out_shape=jax.ShapeDtypeStruct((B, out_size), jnp.float32),
        grid=grid,
        in_specs=[
            pl.BlockSpec((tm, in_size), lambda i: (i, 0)),   # x: streamed over batch
            const(params["w1"].shape),                       # weights/biases: VMEM-resident
            const(params["b1"].shape),
            const(params["w2"].shape),
            const(params["b2"].shape),
            const(params["w3"].shape),
            const(params["b3"].shape),
        ],
        # Narrow, unpadded output (last block dim == full array dim): no wrapper slice.
        out_specs=pl.BlockSpec((tm, out_size), lambda i: (i, 0)),
        compiler_params=pltpu.CompilerParams(
            dimension_semantics=("parallel",),
            vmem_limit_bytes=_VMEM_LIMIT_BYTES,
        ),
    )(x, params["w1"], params["b1"], params["w2"], params["b2"],
      params["w3"], params["b3"])


def dqn_reference(x, p):
    h1 = jnp.maximum(x @ p["w1"] + p["b1"], 0.0)
    h2 = jnp.maximum(h1 @ p["w2"] + p["b2"], 0.0)
    return h2 @ p["w3"] + p["b3"]


if __name__ == "__main__":
    key = jax.random.PRNGKey(0)
    k_x, k_x2, k_p = jax.random.split(key, 3)

    input_size = 16
    output_size = 4

    raw_params = init_params(k_p, input_size, output_size)
    params = prepare_params(raw_params)

    # Case 1: small aligned batch (single exact tile).
    batch = 8
    x = jax.random.normal(k_x, (batch, input_size), jnp.float32)
    out = jax.block_until_ready(dqn_forward(x, params))
    ref = dqn_reference(x, raw_params)
    assert out.shape == (batch, output_size)
    # bf16 matmul inputs with f32 accumulation -> loosened tolerance vs f32 ref.
    assert jnp.allclose(out, ref, atol=3e-2, rtol=3e-2), "mismatch vs reference (case 1)"

    # Case 2: ragged batch + multi-step pipeline (no wrapper padding/slicing).
    batch2 = 20
    x2 = jax.random.normal(k_x2, (batch2, input_size), jnp.float32)
    out2 = jax.block_until_ready(dqn_forward(x2, params, block_rows=16))
    ref2 = dqn_reference(x2, raw_params)
    assert out2.shape == (batch2, output_size)
    assert jnp.allclose(out2, ref2, atol=3e-2, rtol=3e-2), "mismatch vs reference (case 2)"

    print("KERNEL_OK")
</pallas_src>

<mosaic_0001>
module attributes {stable_mosaic.version = 11 : i64} {
  func.func @dqn_kernel(%arg0: i32, %arg1: memref<8x16xf32, #tpu.memory_space<vmem>>, %arg2: memref<16x128xbf16, #tpu.memory_space<vmem>>, %arg3: memref<1x128xf32, #tpu.memory_space<vmem>>, %arg4: memref<128x128xbf16, #tpu.memory_space<vmem>>, %arg5: memref<1x128xf32, #tpu.memory_space<vmem>>, %arg6: memref<128x4xbf16, #tpu.memory_space<vmem>>, %arg7: memref<1x4xf32, #tpu.memory_space<vmem>>, %arg8: memref<8x4xf32, #tpu.memory_space<vmem>>) attributes {dimension_semantics = [#tpu.dimension_semantics<parallel>], iteration_bounds = array<i64: 1>, scalar_prefetch = 0 : i64, scratch_operands = 0 : i64, tpu.core_type = #tpu.core_type<tc>, window_params = [{transform_indices = @transform_0, window_bounds = array<i64: 8, 16>}, {pipeline_mode = #tpu.pipeline_mode<synchronous>, transform_indices = @transform_1, window_bounds = array<i64: 16, 128>}, {pipeline_mode = #tpu.pipeline_mode<synchronous>, transform_indices = @transform_2, window_bounds = array<i64: 1, 128>}, {pipeline_mode = #tpu.pipeline_mode<synchronous>, transform_indices = @transform_3, window_bounds = array<i64: 128, 128>}, {pipeline_mode = #tpu.pipeline_mode<synchronous>, transform_indices = @transform_4, window_bounds = array<i64: 1, 128>}, {pipeline_mode = #tpu.pipeline_mode<synchronous>, transform_indices = @transform_5, window_bounds = array<i64: 128, 4>}, {pipeline_mode = #tpu.pipeline_mode<synchronous>, transform_indices = @transform_6, window_bounds = array<i64: 1, 4>}, {transform_indices = @transform_7, window_bounds = array<i64: 8, 4>}]} {
    %c0 = arith.constant 0 : index
    %c0_0 = arith.constant 0 : index
    %0 = vector.load %arg1[%c0, %c0_0] : memref<8x16xf32, #tpu.memory_space<vmem>>, vector<8x16xf32>
    %1 = arith.truncf %0 : vector<8x16xf32> to vector<8x16xbf16>
    %c0_1 = arith.constant 0 : index
    %c0_2 = arith.constant 0 : index
    %2 = vector.load %arg2[%c0_1, %c0_2] : memref<16x128xbf16, #tpu.memory_space<vmem>>, vector<16x128xbf16>
    %cst = arith.constant dense<0.000000e+00> : vector<8x128xf32>
    %3 = tpu.matmul %1, %2, %cst {dimension_numbers = #tpu.dot_dimension_numbers<[1], [0], [0], [1], [0, 0, 1, 1], [], []>} : vector<8x16xbf16>, vector<16x128xbf16>, vector<8x128xf32> -> vector<8x128xf32>
    %c0_3 = arith.constant 0 : index
    %c0_4 = arith.constant 0 : index
    %4 = vector.load %arg3[%c0_3, %c0_4] : memref<1x128xf32, #tpu.memory_space<vmem>>, vector<1x128xf32>
    %5 = vector.broadcast %4 : vector<1x128xf32> to vector<8x128xf32>
    %6 = arith.addf %3, %5 : vector<8x128xf32>
    %cst_5 = arith.constant 0.000000e+00 : f32
    %7 = vector.broadcast %cst_5 : f32 to vector<8x128xf32>
    %8 = arith.maximumf %6, %7 : vector<8x128xf32>
    %9 = arith.truncf %8 : vector<8x128xf32> to vector<8x128xbf16>
    %c0_6 = arith.constant 0 : index
    %c0_7 = arith.constant 0 : index
    %10 = vector.load %arg4[%c0_6, %c0_7] : memref<128x128xbf16, #tpu.memory_space<vmem>>, vector<128x128xbf16>
    %cst_8 = arith.constant dense<0.000000e+00> : vector<8x128xf32>
    %11 = tpu.matmul %9, %10, %cst_8 {dimension_numbers = #tpu.dot_dimension_numbers<[1], [0], [0], [1], [0, 0, 1, 1], [], []>} : vector<8x128xbf16>, vector<128x128xbf16>, vector<8x128xf32> -> vector<8x128xf32>
    %c0_9 = arith.constant 0 : index
    %c0_10 = arith.constant 0 : index
    %12 = vector.load %arg5[%c0_9, %c0_10] : memref<1x128xf32, #tpu.memory_space<vmem>>, vector<1x128xf32>
    %13 = vector.broadcast %12 : vector<1x128xf32> to vector<8x128xf32>
    %14 = arith.addf %11, %13 : vector<8x128xf32>
    %cst_11 = arith.constant 0.000000e+00 : f32
    %15 = vector.broadcast %cst_11 : f32 to vector<8x128xf32>
    %16 = arith.maximumf %14, %15 : vector<8x128xf32>
    %17 = arith.truncf %16 : vector<8x128xf32> to vector<8x128xbf16>
    %c0_12 = arith.constant 0 : index
    %c0_13 = arith.constant 0 : index
    %18 = vector.load %arg6[%c0_12, %c0_13] : memref<128x4xbf16, #tpu.memory_space<vmem>>, vector<128x4xbf16>
    %cst_14 = arith.constant dense<0.000000e+00> : vector<8x4xf32>
    %19 = tpu.matmul %17, %18, %cst_14 {dimension_numbers = #tpu.dot_dimension_numbers<[1], [0], [0], [1], [0, 0, 1, 1], [], []>} : vector<8x128xbf16>, vector<128x4xbf16>, vector<8x4xf32> -> vector<8x4xf32>
    %c0_15 = arith.constant 0 : index
    %c0_16 = arith.constant 0 : index
    %20 = vector.load %arg7[%c0_15, %c0_16] : memref<1x4xf32, #tpu.memory_space<vmem>>, vector<1x4xf32>
    %21 = vector.broadcast %20 : vector<1x4xf32> to vector<8x4xf32>
    %22 = arith.addf %19, %21 : vector<8x4xf32>
    %c0_17 = arith.constant 0 : index
    %c0_18 = arith.constant 0 : index
    %23 = vector.load %arg8[%c0_17, %c0_18] : memref<8x4xf32, #tpu.memory_space<vmem>>, vector<8x4xf32>
    tpu.vector_store %arg8[%c0_17, %c0_18], %22 {strides = array<i32>} : memref<8x4xf32, #tpu.memory_space<vmem>>, vector<8x4xf32>,
    return
  }
  func.func @transform_0(%arg0: i32) -> (i32, i32) {
    %c0_i32 = arith.constant 0 : i32
    %c0_i32_0 = arith.constant 0 : i32
    return %arg0, %c0_i32 : i32, i32
  }
  func.func @transform_1(%arg0: i32) -> (i32, i32) {
    %c0_i32 = arith.constant 0 : i32
    %c0_i32_0 = arith.constant 0 : i32
    %c0_i32_1 = arith.constant 0 : i32
    return %c0_i32, %c0_i32_0 : i32, i32
  }
  func.func @transform_2(%arg0: i32) -> (i32, i32) {
    %c0_i32 = arith.constant 0 : i32
    %c0_i32_0 = arith.constant 0 : i32
    %c0_i32_1 = arith.constant 0 : i32
    return %c0_i32, %c0_i32_0 : i32, i32
  }
  func.func @transform_3(%arg0: i32) -> (i32, i32) {
    %c0_i32 = arith.constant 0 : i32
    %c0_i32_0 = arith.constant 0 : i32
    %c0_i32_1 = arith.constant 0 : i32
    return %c0_i32, %c0_i32_0 : i32, i32
  }
  func.func @transform_4(%arg0: i32) -> (i32, i32) {
    %c0_i32 = arith.constant 0 : i32
    %c0_i32_0 = arith.constant 0 : i32
    %c0_i32_1 = arith.constant 0 : i32
    return %c0_i32, %c0_i32_0 : i32, i32
  }
  func.func @transform_5(%arg0: i32) -> (i32, i32) {
    %c0_i32 = arith.constant 0 : i32
    %c0_i32_0 = arith.constant 0 : i32
    %c0_i32_1 = arith.constant 0 : i32
    return %c0_i32, %c0_i32_0 : i32, i32
  }
  func.func @transform_6(%arg0: i32) -> (i32, i32) {
    %c0_i32 = arith.constant 0 : i32
    %c0_i32_0 = arith.constant 0 : i32
    %c0_i32_1 = arith.constant 0 : i32
    return %c0_i32, %c0_i32_0 : i32, i32
  }
  func.func @transform_7(%arg0: i32) -> (i32, i32) {
    %c0_i32 = arith.constant 0 : i32
    %c0_i32_0 = arith.constant 0 : i32
    return %arg0, %c0_i32 : i32, i32
  }
}

</mosaic_0001>

<bundles_post_ra>
// kernel: dqn_forward.1
= control target key start
LH: loop header
LB: loop body
LE: loop exit
PB: predicated region body
PF: predicated region fallthrough
CT: control target
= control target key end

     0   :  { %v426_v0 = vmov 0.0   ;;  %vm427_vm0 = vmmov 0   ;;  %vm44_vm1 = vcmask 130048   ;;  %vm314_vm2 = vcmask 31744   ;;  %s554_s1 = inlined_call_operand.vmem [shape: bf16[16,128], index: 1, kind: input, shape index: {}]   ;;  %s555_s0 = inlined_call_operand.vmem [shape: f32[8,16], index: 0, kind: input, shape index: {}]   ;;  %s556_s3 = inlined_call_operand.vmem [shape: bf16[128,128], index: 3, kind: input, shape index: {}]   ;;  %s557_s5 = inlined_call_operand.vmem [shape: bf16[128,4], index: 5, kind: input, shape index: {}]   ;;  %s558_s2 = inlined_call_operand.vmem [shape: f32[1,128], index: 2, kind: input, shape index: {}]   ;;  %s559_s4 = inlined_call_operand.vmem [shape: f32[1,128], index: 4, kind: input, shape index: {}]   ;;  %s560_s6 = inlined_call_operand.vmem [shape: f32[1,4], index: 6, kind: input, shape index: {}]   ;;  %s561_s7 = inlined_call_operand.vmem [shape: f32[8,4], index: 7, kind: output, shape index: {}]  }
   0x1   :  { %361 = vmatprep.subr.bf16.mxu0 %v426_v0  ;;  %v409_v1 = vld [vmem:[%s554_s1] sm:$0xff]   ;;  %363 = vmatprep.mubr.msk.bf16.mxu0 %vm427_vm0, %v426_v0  ;;  %v411_v5 = vld [vmem:[%s556_s3 + $0x8] sm:$0xff]   ;;  %v412_v6 = vld [vmem:[%s556_s3 + $0x10] sm:$0xff]  }
   0x2   :  { %v27_v2 = vld [vmem:[%s555_s0] sm:$0xff]  ;;  %367 = vmatprep.subr.bf16.mxu1 %v426_v0  ;;  %383 = vmatprep.mubr.msk.bf16.mxu1 %vm427_vm0, %v426_v0  ;;  %v413_v7 = vld [vmem:[%s556_s3 + $0x18] sm:$0xff]   ;;  %v415_v9 = vld [vmem:[%s556_s3 + $0x28] sm:$0xff]  }
   0x3   :  { %362 = vmatpush3.bf16.msra.mxu0 %v409_v1  ;;  %v28_v3 = vpack.c.bf16 %v27_v2, %v27_v2  ;;  %v410_v4 = vld [vmem:[%s556_s3] sm:$0xff]   ;;  %v416_v10 = vld [vmem:[%s556_s3 + $0x30] sm:$0xff]   ;;  %v417_v11 = vld [vmem:[%s556_s3 + $0x38] sm:$0xff]  }
   0x4   :  { %387 = vmatprep.subr.bf16.mxu0 %v426_v0  ;;  %368 = vmatpush3.bf16.msra.mxu1 %v410_v4  ;;  %v414_v8 = vld [vmem:[%s556_s3 + $0x20] sm:$0xff]   ;;  %v419_v13 = vld [vmem:[%s557_s5 + $0x8] sm:$0xff]   ;;  %v420_v14 = vld [vmem:[%s557_s5 + $0x10] sm:$0xff]  }
   0x5   :  { %369 = vmatprep.subr.bf16.mxu1 %v426_v0  ;;  %v418_v12 = vld [vmem:[%s557_s5] sm:$0xff]   ;;  %v421_v15 = vld [vmem:[%s557_s5 + $0x18] sm:$0xff]   ;;  %v423_v17 = vld [vmem:[%s557_s5 + $0x28] sm:$0xff]  }
   0x6   :  { %364 = vmatmul.mubr.msk.bf16.vlgmr.msra.gmra.mrb[0].mxu0 %vm44_vm1, %v28_v3  ;;  %v422_v16 = vld [vmem:[%s557_s5 + $0x20] sm:$0xff]   ;;  %v424_v26 = vld [vmem:[%s557_s5 + $0x30] sm:$0xff]   ;;  %v425_v27 = vld [vmem:[%s557_s5 + $0x38] sm:$0xff]  }
   0x7   :  { %403 = vmatprep.mubr.msk.bf16.mxu0 %vm427_vm0, %v426_v0  ;;  %388 = vmatpush3.bf16.msra.mxu0 %v418_v12  ;;  %v320_v18 = vld [vmem:[%s558_s2] ss:$0 sm:$0xff] }
   0x8   :  { %370 = vmatpush3.bf16.msra.mxu1 %v411_v5  ;;  %389 = vmatprep.subr.bf16.mxu0 %v426_v0  ;;  %v323_v28 = vld [vmem:[%s559_s4] ss:$0 sm:$0xff] }
   0x9   :  { %371 = vmatprep.subr.bf16.mxu1 %v426_v0  ;;  %v332_v36 = vld [vmem:[%s560_s6] ss:$0 sm:$0xff] }
   0xb   :  { %390 = vmatpush3.bf16.msra.mxu0 %v419_v13 }
   0xc   :  { %372 = vmatpush3.bf16.msra.mxu1 %v412_v6  ;;  %391 = vmatprep.subr.bf16.mxu0 %v426_v0 }
   0xd   :  { %373 = vmatprep.subr.bf16.mxu1 %v426_v0 }
   0xf   :  { %392 = vmatpush3.bf16.msra.mxu0 %v420_v14 }
  0x10   :  { %374 = vmatpush3.bf16.msra.mxu1 %v413_v7  ;;  %393 = vmatprep.subr.bf16.mxu0 %v426_v0 }
  0x11   :  { %375 = vmatprep.subr.bf16.mxu1 %v426_v0 }
  0x13   :  { %394 = vmatpush3.bf16.msra.mxu0 %v421_v15 }
  0x14   :  { %376 = vmatpush3.bf16.msra.mxu1 %v414_v8  ;;  %395 = vmatprep.subr.bf16.mxu0 %v426_v0 }
  0x15   :  { %377 = vmatprep.subr.bf16.mxu1 %v426_v0 }
  0x17   :  { %396 = vmatpush3.bf16.msra.mxu0 %v422_v16 }
  0x18   :  { %378 = vmatpush3.bf16.msra.mxu1 %v415_v9  ;;  %397 = vmatprep.subr.bf16.mxu0 %v426_v0 }
  0x19   :  { %379 = vmatprep.subr.bf16.mxu1 %v426_v0 }
  0x1b   :  { %398 = vmatpush3.bf16.msra.mxu0 %v423_v17 }
  0x1c   :  { %380 = vmatpush3.bf16.msra.mxu1 %v416_v10  ;;  %399 = vmatprep.subr.bf16.mxu0 %v426_v0 }
  0x1d   :  { %381 = vmatprep.subr.bf16.mxu1 %v426_v0 }
  0x1f   :  { %400 = vmatpush3.bf16.msra.mxu0 %v424_v26 }
  0x20   :  { %382 = vmatpush3.bf16.msra.mxu1 %v417_v11  ;;  %401 = vmatprep.subr.bf16.mxu0 %v426_v0 }
  0x23   :  { %402 = vmatpush3.bf16.msra.mxu0 %v425_v27 }
  0xd9   :  { %v82_v19 = vpop.f32.mrb[0].mxu0 }
  0xda   :  { %v83_v20 = vadd.f32 %v320_v18, %v82_v19  ;;  %v365_v21 = vpop.f32.mrb[1].mxu0 }
  0xdb   :  { %v85_v22 = vpop.f32.mrb[2].mxu0 }
  0xdc   :  { %v88_v23 = vmax.f32 %v83_v20, 0.0  ;;  %v366_v24 = vpop.f32.mrb[3].mxu0 }
  0xde   :  { %v89_v25 = vpack.c.bf16 %v88_v23, %v88_v23 }
  0xe0   :  { %384 = vmatmul.mubr.bf16.vlgmr.msra.gmra.mrb[0].mxu1 %v89_v25 }
 0x1b3   :  { %v195_v29 = vpop.f32.mrb[0].mxu1 }
 0x1b4   :  { %v196_v30 = vadd.f32 %v323_v28, %v195_v29  ;;  %v385_v31 = vpop.f32.mrb[1].mxu1 }
 0x1b5   :  { %v198_v32 = vpop.f32.mrb[2].mxu1 }
 0x1b6   :  { %v201_v33 = vmax.f32 %v196_v30, 0.0  ;;  %v386_v34 = vpop.f32.mrb[3].mxu1 }
 0x1b8   :  { %v202_v35 = vpack.c.bf16 %v201_v33, %v201_v33 }
 0x1ba   :  { %404 = vmatmul.mubr.bf16.vlgmr.msra.gmra.mrb[4].mxu0 %v202_v35 }
 0x28d   :  { %v308_v37 = vpop.f32.mrb[4].mxu0 }
 0x28e   :  { %v309_v38 = vadd.f32 %v332_v36, %v308_v37  ;;  %v405_v39 = vpop.f32.mrb[5].mxu0 }
 0x28f   :  { %v311_v40 = vpop.f32.mrb[6].mxu0 }
 0x290   :  { %315 = vst.msk [vmem:[%s561_s7] sm:$0xff] %vm314_vm2, %v309_v38  ;;  %v406_v41 = vpop.f32.mrb[7].mxu0 }

</bundles_post_ra>
